<compile_context>
chip_gen: v6e
topology: v6e:2x2x1
jax: 0.10.0
libtpu: 0.0.40
codegen_flags: <defaults>
</compile_context>

<pallas_src>
import math

import jax
import jax.numpy as jnp
from jax.experimental import pallas as pl
from jax.experimental.pallas import tpu as pltpu


def _layernorm(x, gamma, beta, eps=1e-5):
    mu = jnp.mean(x, axis=-1, keepdims=True)
    var = jnp.mean((x - mu) ** 2, axis=-1, keepdims=True)
    return (x - mu) * jax.lax.rsqrt(var + eps) * gamma + beta


def make_encoder_block_fn(B, S, D, F, num_heads, *, batch_tile=None):
    H = num_heads
    assert D % H == 0
    dh = D // H
    Bt = B if batch_tile is None else batch_tile
    assert B % Bt == 0
    scale = 1.0 / math.sqrt(dh)

    def kernel(vl_ref, x_ref,
               wqkv_ref, bqkv_ref, wo_ref, bo_ref,
               g1_ref, be1_ref, w1_ref, b1_ref, w2_ref, b2_ref,
               g2_ref, be2_ref, out_ref):
        # ---- activations (bf16 in HBM, f32 compute where it matters) ------
        x_bf = x_ref[...]                              # (Bt, S, D) bf16
        x2 = x_bf.reshape(Bt * S, D)                   # rows ordered (b, s)
        xf = x2.astype(jnp.float32)

        # ---- fused QKV projection: ONE (Bt*S, D) @ (D, 3D) MXU matmul -----
        qkv = jnp.dot(x2, wqkv_ref[...],
                      preferred_element_type=jnp.float32) + bqkv_ref[...]
        qkv3 = qkv.reshape(Bt, S, 3 * D)

        # fold 1/sqrt(dh) into q (cheaper than scaling (S,S) scores)
        q3 = qkv3[:, :, :D] * scale
        k3 = qkv3[:, :, D:2 * D]
        v3 = qkv3[:, :, 2 * D:]

        # ---- split heads: lane slices + leading-dim stack (no transpose) --
        def split_heads(t):            # (Bt, S, D) -> (H*Bt, S, dh), n=h*Bt+b
            parts = [t[:, :, h * dh:(h + 1) * dh] for h in range(H)]
            return jnp.stack(parts, axis=0).reshape(H * Bt, S, dh)

        qh = split_heads(q3).astype(jnp.bfloat16)
        kh = split_heads(k3).astype(jnp.bfloat16)
        vh = split_heads(v3).astype(jnp.bfloat16)

        # ---- batched multi-head attention: one einsum per stage -----------
        s = jnp.einsum('nqd,nkd->nqk', qh, kh,
                       preferred_element_type=jnp.float32)      # (H*Bt, S, S)

        # d2l masked_softmax: keys >= valid_len get -1e6 before softmax
        vl = vl_ref[...]                                         # (Bt, 1) i32
        vl_n = jnp.concatenate([vl] * H, axis=0)                 # (H*Bt, 1)
        col = jax.lax.broadcasted_iota(jnp.int32, (H * Bt, S, S), 2)
        s = jnp.where(col < vl_n[:, :, None], s, -1e6)

        m = jnp.max(s, axis=-1, keepdims=True)
        p = jnp.exp(s - m)
        l = jnp.sum(p, axis=-1, keepdims=True)
        p = p * pl.reciprocal(l, approx=True)                    # EUP divide

        o = jnp.einsum('nqk,nkd->nqd', p.astype(jnp.bfloat16), vh,
                       preferred_element_type=jnp.float32)       # (H*Bt,S,dh)

        # ---- merge heads back onto lanes, ONE W_o matmul -------------------
        o4 = o.reshape(H, Bt, S, dh)
        o_cat = jnp.concatenate([o4[h] for h in range(H)], axis=-1)  # (Bt,S,D)
        o2 = o_cat.reshape(Bt * S, D)
        attn = jnp.dot(o2.astype(jnp.bfloat16), wo_ref[...],
                       preferred_element_type=jnp.float32) + bo_ref[...]

        # ---- AddNorm 1 (dropout == identity at inference) ------------------
        y = _layernorm(xf + attn, g1_ref[...], be1_ref[...])

        # ---- position-wise FFN ---------------------------------------------
        h1 = jnp.dot(y.astype(jnp.bfloat16), w1_ref[...],
                     preferred_element_type=jnp.float32) + b1_ref[...]
        h1 = jnp.maximum(h1, 0.0)
        f = jnp.dot(h1.astype(jnp.bfloat16), w2_ref[...],
                    preferred_element_type=jnp.float32) + b2_ref[...]

        # ---- AddNorm 2 ------------------------------------------------------
        z = _layernorm(y + f, g2_ref[...], be2_ref[...])
        out_ref[...] = z.reshape(Bt, S, D).astype(out_ref.dtype)

    # -------------------- specs / compiler params ---------------------------
    weight_specs = [
        ((D, 3 * D), jnp.bfloat16),   # wqkv
        ((1, 3 * D), jnp.float32),    # bqkv
        ((D, D),     jnp.bfloat16),   # wo
        ((1, D),     jnp.float32),    # bo
        ((1, D),     jnp.float32),    # g1
        ((1, D),     jnp.float32),    # be1
        ((D, F),     jnp.bfloat16),   # w1
        ((1, F),     jnp.float32),    # b1
        ((F, D),     jnp.bfloat16),   # w2
        ((1, D),     jnp.float32),    # b2
        ((1, D),     jnp.float32),    # g2
        ((1, D),     jnp.float32),    # be2
    ]

    def _const_spec(shape):
        # NOTE: for very large D/F on v7x, add pipeline_mode=pl.Buffered(1)
        # here to single-buffer the resident weights.
        return pl.BlockSpec(shape, lambda i: (0, 0))

    in_specs = ([pl.BlockSpec((Bt, 1), lambda i: (i, 0)),          # valid_lens
                 pl.BlockSpec((Bt, S, D), lambda i: (i, 0, 0))]    # activations
                + [_const_spec(shape) for shape, _ in weight_specs])
    out_spec = pl.BlockSpec((Bt, S, D), lambda i: (i, 0, 0))

    def _nbytes(shape, dt):
        n = 1
        for d in shape:
            n *= d
        return n * jnp.dtype(dt).itemsize

    weight_bytes = sum(_nbytes(s, dt) for s, dt in weight_specs)
    act_bytes = (4 * Bt * S * D * 2                      # in/out double-buffered
                 + Bt * S * (3 * D + F + 8 * D) * 4      # f32 intermediates
                 + 2 * H * Bt * S * S * 4)               # scores / probs
    vmem_limit = int(min(48 * 2**20, max(32 * 2**20, 2 * (2 * weight_bytes + act_bytes))))

    flops_per_b = (2 * S * D * 3 * D      # QKV
                   + 4 * S * S * D        # QK^T + PV
                   + 2 * S * D * D        # W_o
                   + 4 * S * D * F)       # FFN
    cost = pl.CostEstimate(
        flops=int(B * flops_per_b),
        transcendentals=int(B * H * S * S),
        bytes_accessed=int(2 * B * S * D * 2 + weight_bytes + 4 * B))

    call = pl.pallas_call(
        kernel,
        grid=(B // Bt,),
        in_specs=in_specs,
        out_specs=out_spec,
        out_shape=jax.ShapeDtypeStruct((B, S, D), jnp.bfloat16),
        compiler_params=pltpu.CompilerParams(
            dimension_semantics=("parallel",),    # 2 TensorCores on v7x
            vmem_limit_bytes=vmem_limit),
        cost_estimate=cost,
    )

    def apply(x, valid_lens_2d, p):
        return call(valid_lens_2d, x,
                    p["wqkv"], p["bqkv"], p["wo"], p["bo"],
                    p["g1"], p["be1"], p["w1"], p["b1"], p["w2"], p["b2"],
                    p["g2"], p["be2"])

    return apply


# ----------------------------------------------------------------------------
# Parameter init + full encoder forward
# ----------------------------------------------------------------------------
def init_bert_params(key, vocab_size, D, F, num_heads, num_blks, max_len):
    keys = jax.random.split(key, 3 + num_blks)
    wdt = jnp.bfloat16
    params = {
        "token_embedding": (0.02 * jax.random.normal(keys[0], (vocab_size, D))).astype(wdt),
        "segment_embedding": (0.02 * jax.random.normal(keys[1], (2, D))).astype(wdt),
        "pos_embedding": jax.random.normal(keys[2], (1, max_len, D)).astype(wdt),
        "blocks": [],
    }
    for i in range(num_blks):
        bk = jax.random.split(keys[3 + i], 4)
        blk = {
            # fused QKV weight: columns are [Wq | Wk | Wv]
            "wqkv": (0.02 * jax.random.normal(bk[0], (D, 3 * D))).astype(wdt),
            "bqkv": jnp.zeros((1, 3 * D), jnp.float32),
            "wo": (0.02 * jax.random.normal(bk[1], (D, D))).astype(wdt),
            "bo": jnp.zeros((1, D), jnp.float32),
            "g1": jnp.ones((1, D), jnp.float32),
            "be1": jnp.zeros((1, D), jnp.float32),
            "w1": (0.02 * jax.random.normal(bk[2], (D, F))).astype(wdt),
            "b1": jnp.zeros((1, F), jnp.float32),
            "w2": (0.02 * jax.random.normal(bk[3], (F, D))).astype(wdt),
            "b2": jnp.zeros((1, D), jnp.float32),
            "g2": jnp.ones((1, D), jnp.float32),
            "be2": jnp.zeros((1, D), jnp.float32),
        }
        params["blocks"].append(blk)
    return params


def bert_encoder(params, tokens, segments, valid_lens, num_heads):
    B, S = tokens.shape
    D = params["token_embedding"].shape[1]
    F = params["blocks"][0]["w1"].shape[1]

    # Embedding gathers + adds are pure indexing glue: kept in plain JAX so
    # XLA fuses the adds with the gathers (no extra HBM round trip from a
    # standalone Pallas add kernel).
    tok = jnp.take(params["token_embedding"], tokens, axis=0)       # (B, S, D)
    seg = jnp.take(params["segment_embedding"], segments, axis=0)   # (B, S, D)
    pos = params["pos_embedding"][0, :S, :]                         # (S, D)
    x = (tok + seg + pos[None, :, :]).astype(jnp.bfloat16)

    vl2 = valid_lens.astype(jnp.int32).reshape(B, 1)

    block_fn = make_encoder_block_fn(B, S, D, F, num_heads)
    for blk in params["blocks"]:
        x = block_fn(x, vl2, blk)
    return x


if __name__ == "__main__":
    vocab_size, num_hiddens, ffn_num_hiddens = 100, 32, 64
    num_heads, num_blks, max_len = 2, 2, 16
    B, S = 2, 8

    key = jax.random.PRNGKey(0)
    kp, kt, ks = jax.random.split(key, 3)

    params = init_bert_params(kp, vocab_size, num_hiddens, ffn_num_hiddens,
                              num_heads, num_blks, max_len)

    tokens = jax.random.randint(kt, (B, S), 0, vocab_size, dtype=jnp.int32)
    segments = jax.random.randint(ks, (B, S), 0, 2, dtype=jnp.int32)
    valid_lens = jnp.array([8, 5], dtype=jnp.int32)

    out = bert_encoder(params, tokens, segments, valid_lens, num_heads)
    jax.block_until_ready(out)
    assert out.shape == (B, S, num_hiddens)
    print("KERNEL_OK")
</pallas_src>

<mosaic_0001>
module attributes {stable_mosaic.version = 11 : i64} {
  func.func @kernel(%arg0: i32, %arg1: memref<2x1xi32, #tpu.memory_space<vmem>>, %arg2: memref<2x8x32xbf16, #tpu.memory_space<vmem>>, %arg3: memref<32x96xbf16, #tpu.memory_space<vmem>>, %arg4: memref<1x96xf32, #tpu.memory_space<vmem>>, %arg5: memref<32x32xbf16, #tpu.memory_space<vmem>>, %arg6: memref<1x32xf32, #tpu.memory_space<vmem>>, %arg7: memref<1x32xf32, #tpu.memory_space<vmem>>, %arg8: memref<1x32xf32, #tpu.memory_space<vmem>>, %arg9: memref<32x64xbf16, #tpu.memory_space<vmem>>, %arg10: memref<1x64xf32, #tpu.memory_space<vmem>>, %arg11: memref<64x32xbf16, #tpu.memory_space<vmem>>, %arg12: memref<1x32xf32, #tpu.memory_space<vmem>>, %arg13: memref<1x32xf32, #tpu.memory_space<vmem>>, %arg14: memref<1x32xf32, #tpu.memory_space<vmem>>, %arg15: memref<2x8x32xbf16, #tpu.memory_space<vmem>>) attributes {dimension_semantics = [#tpu.dimension_semantics<parallel>], iteration_bounds = array<i64: 1>, scalar_prefetch = 0 : i64, scratch_operands = 0 : i64, tpu.core_type = #tpu.core_type<tc>, window_params = [{transform_indices = @transform_0, window_bounds = array<i64: 2, 1>}, {transform_indices = @transform_1, window_bounds = array<i64: 2, 8, 32>}, {pipeline_mode = #tpu.pipeline_mode<synchronous>, transform_indices = @transform_2, window_bounds = array<i64: 32, 96>}, {pipeline_mode = #tpu.pipeline_mode<synchronous>, transform_indices = @transform_3, window_bounds = array<i64: 1, 96>}, {pipeline_mode = #tpu.pipeline_mode<synchronous>, transform_indices = @transform_4, window_bounds = array<i64: 32, 32>}, {pipeline_mode = #tpu.pipeline_mode<synchronous>, transform_indices = @transform_5, window_bounds = array<i64: 1, 32>}, {pipeline_mode = #tpu.pipeline_mode<synchronous>, transform_indices = @transform_6, window_bounds = array<i64: 1, 32>}, {pipeline_mode = #tpu.pipeline_mode<synchronous>, transform_indices = @transform_7, window_bounds = array<i64: 1, 32>}, {pipeline_mode = #tpu.pipeline_mode<synchronous>, transform_indices = @transform_8, window_bounds = array<i64: 32, 64>}, {pipeline_mode = #tpu.pipeline_mode<synchronous>, transform_indices = @transform_9, window_bounds = array<i64: 1, 64>}, {pipeline_mode = #tpu.pipeline_mode<synchronous>, transform_indices = @transform_10, window_bounds = array<i64: 64, 32>}, {pipeline_mode = #tpu.pipeline_mode<synchronous>, transform_indices = @transform_11, window_bounds = array<i64: 1, 32>}, {pipeline_mode = #tpu.pipeline_mode<synchronous>, transform_indices = @transform_12, window_bounds = array<i64: 1, 32>}, {pipeline_mode = #tpu.pipeline_mode<synchronous>, transform_indices = @transform_13, window_bounds = array<i64: 1, 32>}, {transform_indices = @transform_14, window_bounds = array<i64: 2, 8, 32>}]} {
    %c0 = arith.constant 0 : index
    %c0_0 = arith.constant 0 : index
    %c0_1 = arith.constant 0 : index
    %0 = vector.load %arg2[%c0, %c0_0, %c0_1] : memref<2x8x32xbf16, #tpu.memory_space<vmem>>, vector<2x8x32xbf16>
    %1 = vector.shape_cast %0 : vector<2x8x32xbf16> to vector<16x32xbf16>
    %2 = arith.extf %1 : vector<16x32xbf16> to vector<16x32xf32>
    %c0_2 = arith.constant 0 : index
    %c0_3 = arith.constant 0 : index
    %3 = vector.load %arg3[%c0_2, %c0_3] : memref<32x96xbf16, #tpu.memory_space<vmem>>, vector<32x96xbf16>
    %cst = arith.constant dense<0.000000e+00> : vector<16x96xf32>
    %4 = tpu.matmul %1, %3, %cst {dimension_numbers = #tpu.dot_dimension_numbers<[1], [0], [0], [1], [0, 0, 1, 1], [], []>} : vector<16x32xbf16>, vector<32x96xbf16>, vector<16x96xf32> -> vector<16x96xf32>
    %c0_4 = arith.constant 0 : index
    %c0_5 = arith.constant 0 : index
    %5 = vector.load %arg4[%c0_4, %c0_5] : memref<1x96xf32, #tpu.memory_space<vmem>>, vector<1x96xf32>
    %6 = vector.broadcast %5 : vector<1x96xf32> to vector<16x96xf32>
    %7 = arith.addf %4, %6 : vector<16x96xf32>
    %8 = vector.shape_cast %7 : vector<16x96xf32> to vector<2x8x96xf32>
    %9 = vector.extract_strided_slice %8 {offsets = [0, 0, 0], sizes = [2, 8, 32], strides = [1, 1, 1]} : vector<2x8x96xf32> to vector<2x8x32xf32>
    %cst_6 = arith.constant 2.500000e-01 : f32
    %10 = vector.broadcast %cst_6 : f32 to vector<2x8x32xf32>
    %11 = arith.mulf %9, %10 : vector<2x8x32xf32>
    %12 = vector.extract_strided_slice %8 {offsets = [0, 0, 32], sizes = [2, 8, 32], strides = [1, 1, 1]} : vector<2x8x96xf32> to vector<2x8x32xf32>
    %13 = vector.extract_strided_slice %8 {offsets = [0, 0, 64], sizes = [2, 8, 32], strides = [1, 1, 1]} : vector<2x8x96xf32> to vector<2x8x32xf32>
    %14 = vector.extract_strided_slice %11 {offsets = [0, 0, 0], sizes = [2, 8, 16], strides = [1, 1, 1]} : vector<2x8x32xf32> to vector<2x8x16xf32>
    %15 = vector.extract_strided_slice %11 {offsets = [0, 0, 16], sizes = [2, 8, 16], strides = [1, 1, 1]} : vector<2x8x32xf32> to vector<2x8x16xf32>
    %16 = vector.shape_cast %14 : vector<2x8x16xf32> to vector<1x2x8x16xf32>
    %17 = vector.shape_cast %15 : vector<2x8x16xf32> to vector<1x2x8x16xf32>
    %18 = tpu.concatenate %16, %17 in 0 : vector<1x2x8x16xf32>, vector<1x2x8x16xf32> -> vector<2x2x8x16xf32>
    %19 = vector.shape_cast %18 : vector<2x2x8x16xf32> to vector<4x8x16xf32>
    %20 = arith.truncf %19 : vector<4x8x16xf32> to vector<4x8x16xbf16>
    %21 = vector.extract_strided_slice %12 {offsets = [0, 0, 0], sizes = [2, 8, 16], strides = [1, 1, 1]} : vector<2x8x32xf32> to vector<2x8x16xf32>
    %22 = vector.extract_strided_slice %12 {offsets = [0, 0, 16], sizes = [2, 8, 16], strides = [1, 1, 1]} : vector<2x8x32xf32> to vector<2x8x16xf32>
    %23 = vector.shape_cast %21 : vector<2x8x16xf32> to vector<1x2x8x16xf32>
    %24 = vector.shape_cast %22 : vector<2x8x16xf32> to vector<1x2x8x16xf32>
    %25 = tpu.concatenate %23, %24 in 0 : vector<1x2x8x16xf32>, vector<1x2x8x16xf32> -> vector<2x2x8x16xf32>
    %26 = vector.shape_cast %25 : vector<2x2x8x16xf32> to vector<4x8x16xf32>
    %27 = arith.truncf %26 : vector<4x8x16xf32> to vector<4x8x16xbf16>
    %28 = vector.extract_strided_slice %13 {offsets = [0, 0, 0], sizes = [2, 8, 16], strides = [1, 1, 1]} : vector<2x8x32xf32> to vector<2x8x16xf32>
    %29 = vector.extract_strided_slice %13 {offsets = [0, 0, 16], sizes = [2, 8, 16], strides = [1, 1, 1]} : vector<2x8x32xf32> to vector<2x8x16xf32>
    %30 = vector.shape_cast %28 : vector<2x8x16xf32> to vector<1x2x8x16xf32>
    %31 = vector.shape_cast %29 : vector<2x8x16xf32> to vector<1x2x8x16xf32>
    %32 = tpu.concatenate %30, %31 in 0 : vector<1x2x8x16xf32>, vector<1x2x8x16xf32> -> vector<2x2x8x16xf32>
    %33 = vector.shape_cast %32 : vector<2x2x8x16xf32> to vector<4x8x16xf32>
    %34 = arith.truncf %33 : vector<4x8x16xf32> to vector<4x8x16xbf16>
    "tpu.trace_start"() <{level = 10 : i32, message = "nqd,nkd->nqk"}> : () -> ()
    %cst_7 = arith.constant dense<0.000000e+00> : vector<4x8x8xf32>
    %35 = tpu.matmul %20, %27, %cst_7 {dimension_numbers = #tpu.dot_dimension_numbers<[2], [2], [1], [1], [0, 0, 0, 1, 1, 1], [0], [0]>} : vector<4x8x16xbf16>, vector<4x8x16xbf16>, vector<4x8x8xf32> -> vector<4x8x8xf32>
    "tpu.trace_stop"() : () -> ()
    %c0_8 = arith.constant 0 : index
    %c0_9 = arith.constant 0 : index
    %36 = vector.load %arg1[%c0_8, %c0_9] : memref<2x1xi32, #tpu.memory_space<vmem>>, vector<2x1xi32>
    %37 = tpu.concatenate %36, %36 in 0 : vector<2x1xi32>, vector<2x1xi32> -> vector<4x1xi32>
    %38 = tpu.iota {dimensions = array<i32: 2>} : vector<4x8x8xi32>
    %39 = vector.shape_cast %37 : vector<4x1xi32> to vector<4x1x1xi32>
    %40 = vector.broadcast %39 : vector<4x1x1xi32> to vector<4x8x8xi32>
    %41 = arith.cmpi slt, %38, %40 : vector<4x8x8xi32>
    %cst_10 = arith.constant -1.000000e+06 : f32
    %42 = vector.broadcast %cst_10 : f32 to vector<4x8x8xf32>
    %43 = arith.select %41, %35, %42 : vector<4x8x8xi1>, vector<4x8x8xf32>
    %cst_11 = arith.constant dense<0xFF800000> : vector<4x8xf32>
    %44 = vector.multi_reduction <maximumf>, %43, %cst_11 [2] : vector<4x8x8xf32> to vector<4x8xf32>
    %45 = vector.shape_cast %44 : vector<4x8xf32> to vector<4x8x1xf32>
    %46 = vector.broadcast %45 : vector<4x8x1xf32> to vector<4x8x8xf32>
    %47 = arith.subf %43, %46 : vector<4x8x8xf32>
    %48 = math.exp %47 : vector<4x8x8xf32>
    %cst_12 = arith.constant dense<0.000000e+00> : vector<4x8xf32>
    %49 = vector.multi_reduction <add>, %48, %cst_12 [2] : vector<4x8x8xf32> to vector<4x8xf32>
    %50 = vector.shape_cast %49 : vector<4x8xf32> to vector<4x8x1xf32>
    %51 = tpu.reciprocal %50 {approx = true} : vector<4x8x1xf32> -> vector<4x8x1xf32>
    %52 = vector.broadcast %51 : vector<4x8x1xf32> to vector<4x8x8xf32>
    %53 = arith.mulf %48, %52 : vector<4x8x8xf32>
    %54 = arith.truncf %53 : vector<4x8x8xf32> to vector<4x8x8xbf16>
    "tpu.trace_start"() <{level = 10 : i32, message = "nqk,nkd->nqd"}> : () -> ()
    %cst_13 = arith.constant dense<0.000000e+00> : vector<4x8x16xf32>
    %55 = tpu.matmul %54, %34, %cst_13 {dimension_numbers = #tpu.dot_dimension_numbers<[2], [1], [1], [2], [0, 0, 0, 1, 1, 2], [0], [0]>} : vector<4x8x8xbf16>, vector<4x8x16xbf16>, vector<4x8x16xf32> -> vector<4x8x16xf32>
    "tpu.trace_stop"() : () -> ()
    %56 = vector.shape_cast %55 : vector<4x8x16xf32> to vector<2x2x8x16xf32>
    %57 = vector.extract_strided_slice %56 {offsets = [0, 0, 0, 0], sizes = [1, 2, 8, 16], strides = [1, 1, 1, 1]} : vector<2x2x8x16xf32> to vector<1x2x8x16xf32>
    %58 = vector.shape_cast %57 : vector<1x2x8x16xf32> to vector<2x8x16xf32>
    %59 = vector.extract_strided_slice %56 {offsets = [1, 0, 0, 0], sizes = [1, 2, 8, 16], strides = [1, 1, 1, 1]} : vector<2x2x8x16xf32> to vector<1x2x8x16xf32>
    %60 = vector.shape_cast %59 : vector<1x2x8x16xf32> to vector<2x8x16xf32>
    %61 = tpu.concatenate %58, %60 in 2 : vector<2x8x16xf32>, vector<2x8x16xf32> -> vector<2x8x32xf32>
    %62 = vector.shape_cast %61 : vector<2x8x32xf32> to vector<16x32xf32>
    %63 = arith.truncf %62 : vector<16x32xf32> to vector<16x32xbf16>
    %c0_14 = arith.constant 0 : index
    %c0_15 = arith.constant 0 : index
    %64 = vector.load %arg5[%c0_14, %c0_15] : memref<32x32xbf16, #tpu.memory_space<vmem>>, vector<32x32xbf16>
    %cst_16 = arith.constant dense<0.000000e+00> : vector<16x32xf32>
    %65 = tpu.matmul %63, %64, %cst_16 {dimension_numbers = #tpu.dot_dimension_numbers<[1], [0], [0], [1], [0, 0, 1, 1], [], []>} : vector<16x32xbf16>, vector<32x32xbf16>, vector<16x32xf32> -> vector<16x32xf32>
    %c0_17 = arith.constant 0 : index
    %c0_18 = arith.constant 0 : index
    %66 = vector.load %arg6[%c0_17, %c0_18] : memref<1x32xf32, #tpu.memory_space<vmem>>, vector<1x32xf32>
    %67 = vector.broadcast %66 : vector<1x32xf32> to vector<16x32xf32>
    %68 = arith.addf %65, %67 : vector<16x32xf32>
    %69 = arith.addf %2, %68 : vector<16x32xf32>
    %c0_19 = arith.constant 0 : index
    %c0_20 = arith.constant 0 : index
    %70 = vector.load %arg7[%c0_19, %c0_20] : memref<1x32xf32, #tpu.memory_space<vmem>>, vector<1x32xf32>
    %c0_21 = arith.constant 0 : index
    %c0_22 = arith.constant 0 : index
    %71 = vector.load %arg8[%c0_21, %c0_22] : memref<1x32xf32, #tpu.memory_space<vmem>>, vector<1x32xf32>
    %cst_23 = arith.constant dense<0.000000e+00> : vector<16xf32>
    %72 = vector.multi_reduction <add>, %69, %cst_23 [1] : vector<16x32xf32> to vector<16xf32>
    %73 = vector.shape_cast %72 : vector<16xf32> to vector<16x1xf32>
    %cst_24 = arith.constant 3.200000e+01 : f32
    %74 = vector.broadcast %cst_24 : f32 to vector<16x1xf32>
    %75 = arith.divf %73, %74 : vector<16x1xf32>
    %76 = vector.broadcast %75 : vector<16x1xf32> to vector<16x32xf32>
    %77 = arith.subf %69, %76 : vector<16x32xf32>
    %78 = arith.mulf %77, %77 : vector<16x32xf32>
    %cst_25 = arith.constant dense<0.000000e+00> : vector<16xf32>
    %79 = vector.multi_reduction <add>, %78, %cst_25 [1] : vector<16x32xf32> to vector<16xf32>
    %80 = vector.shape_cast %79 : vector<16xf32> to vector<16x1xf32>
    %cst_26 = arith.constant 3.200000e+01 : f32
    %81 = vector.broadcast %cst_26 : f32 to vector<16x1xf32>
    %82 = arith.divf %80, %81 : vector<16x1xf32>
    %83 = vector.broadcast %75 : vector<16x1xf32> to vector<16x32xf32>
    %84 = arith.subf %69, %83 : vector<16x32xf32>
    %cst_27 = arith.constant 9.99999974E-6 : f32
    %85 = vector.broadcast %cst_27 : f32 to vector<16x1xf32>
    %86 = arith.addf %82, %85 : vector<16x1xf32>
    %87 = math.rsqrt %86 : vector<16x1xf32>
    %88 = vector.broadcast %87 : vector<16x1xf32> to vector<16x32xf32>
    %89 = arith.mulf %84, %88 : vector<16x32xf32>
    %90 = vector.broadcast %70 : vector<1x32xf32> to vector<16x32xf32>
    %91 = arith.mulf %89, %90 : vector<16x32xf32>
    %92 = vector.broadcast %71 : vector<1x32xf32> to vector<16x32xf32>
    %93 = arith.addf %91, %92 : vector<16x32xf32>
    %94 = arith.truncf %93 : vector<16x32xf32> to vector<16x32xbf16>
    %c0_28 = arith.constant 0 : index
    %c0_29 = arith.constant 0 : index
    %95 = vector.load %arg9[%c0_28, %c0_29] : memref<32x64xbf16, #tpu.memory_space<vmem>>, vector<32x64xbf16>
    %cst_30 = arith.constant dense<0.000000e+00> : vector<16x64xf32>
    %96 = tpu.matmul %94, %95, %cst_30 {dimension_numbers = #tpu.dot_dimension_numbers<[1], [0], [0], [1], [0, 0, 1, 1], [], []>} : vector<16x32xbf16>, vector<32x64xbf16>, vector<16x64xf32> -> vector<16x64xf32>
    %c0_31 = arith.constant 0 : index
    %c0_32 = arith.constant 0 : index
    %97 = vector.load %arg10[%c0_31, %c0_32] : memref<1x64xf32, #tpu.memory_space<vmem>>, vector<1x64xf32>
    %98 = vector.broadcast %97 : vector<1x64xf32> to vector<16x64xf32>
    %99 = arith.addf %96, %98 : vector<16x64xf32>
    %cst_33 = arith.constant 0.000000e+00 : f32
    %100 = vector.broadcast %cst_33 : f32 to vector<16x64xf32>
    %101 = arith.maximumf %99, %100 : vector<16x64xf32>
    %102 = arith.truncf %101 : vector<16x64xf32> to vector<16x64xbf16>
    %c0_34 = arith.constant 0 : index
    %c0_35 = arith.constant 0 : index
    %103 = vector.load %arg11[%c0_34, %c0_35] : memref<64x32xbf16, #tpu.memory_space<vmem>>, vector<64x32xbf16>
    %cst_36 = arith.constant dense<0.000000e+00> : vector<16x32xf32>
    %104 = tpu.matmul %102, %103, %cst_36 {dimension_numbers = #tpu.dot_dimension_numbers<[1], [0], [0], [1], [0, 0, 1, 1], [], []>} : vector<16x64xbf16>, vector<64x32xbf16>, vector<16x32xf32> -> vector<16x32xf32>
    %c0_37 = arith.constant 0 : index
    %c0_38 = arith.constant 0 : index
    %105 = vector.load %arg12[%c0_37, %c0_38] : memref<1x32xf32, #tpu.memory_space<vmem>>, vector<1x32xf32>
    %106 = vector.broadcast %105 : vector<1x32xf32> to vector<16x32xf32>
    %107 = arith.addf %104, %106 : vector<16x32xf32>
    %108 = arith.addf %93, %107 : vector<16x32xf32>
    %c0_39 = arith.constant 0 : index
    %c0_40 = arith.constant 0 : index
    %109 = vector.load %arg13[%c0_39, %c0_40] : memref<1x32xf32, #tpu.memory_space<vmem>>, vector<1x32xf32>
    %c0_41 = arith.constant 0 : index
    %c0_42 = arith.constant 0 : index
    %110 = vector.load %arg14[%c0_41, %c0_42] : memref<1x32xf32, #tpu.memory_space<vmem>>, vector<1x32xf32>
    %cst_43 = arith.constant dense<0.000000e+00> : vector<16xf32>
    %111 = vector.multi_reduction <add>, %108, %cst_43 [1] : vector<16x32xf32> to vector<16xf32>
    %112 = vector.shape_cast %111 : vector<16xf32> to vector<16x1xf32>
    %cst_44 = arith.constant 3.200000e+01 : f32
    %113 = vector.broadcast %cst_44 : f32 to vector<16x1xf32>
    %114 = arith.divf %112, %113 : vector<16x1xf32>
    %115 = vector.broadcast %114 : vector<16x1xf32> to vector<16x32xf32>
    %116 = arith.subf %108, %115 : vector<16x32xf32>
    %117 = arith.mulf %116, %116 : vector<16x32xf32>
    %cst_45 = arith.constant dense<0.000000e+00> : vector<16xf32>
    %118 = vector.multi_reduction <add>, %117, %cst_45 [1] : vector<16x32xf32> to vector<16xf32>
    %119 = vector.shape_cast %118 : vector<16xf32> to vector<16x1xf32>
    %cst_46 = arith.constant 3.200000e+01 : f32
    %120 = vector.broadcast %cst_46 : f32 to vector<16x1xf32>
    %121 = arith.divf %119, %120 : vector<16x1xf32>
    %122 = vector.broadcast %114 : vector<16x1xf32> to vector<16x32xf32>
    %123 = arith.subf %108, %122 : vector<16x32xf32>
    %cst_47 = arith.constant 9.99999974E-6 : f32
    %124 = vector.broadcast %cst_47 : f32 to vector<16x1xf32>
    %125 = arith.addf %121, %124 : vector<16x1xf32>
    %126 = math.rsqrt %125 : vector<16x1xf32>
    %127 = vector.broadcast %126 : vector<16x1xf32> to vector<16x32xf32>
    %128 = arith.mulf %123, %127 : vector<16x32xf32>
    %129 = vector.broadcast %109 : vector<1x32xf32> to vector<16x32xf32>
    %130 = arith.mulf %128, %129 : vector<16x32xf32>
    %131 = vector.broadcast %110 : vector<1x32xf32> to vector<16x32xf32>
    %132 = arith.addf %130, %131 : vector<16x32xf32>
    %133 = vector.shape_cast %132 : vector<16x32xf32> to vector<2x8x32xf32>
    %134 = arith.truncf %133 : vector<2x8x32xf32> to vector<2x8x32xbf16>
    %c0_48 = arith.constant 0 : index
    %c0_49 = arith.constant 0 : index
    %c0_50 = arith.constant 0 : index
    %135 = vector.load %arg15[%c0_48, %c0_49, %c0_50] : memref<2x8x32xbf16, #tpu.memory_space<vmem>>, vector<2x8x32xbf16>
    tpu.vector_store %arg15[%c0_48, %c0_49, %c0_50], %134 {strides = array<i32>} : memref<2x8x32xbf16, #tpu.memory_space<vmem>>, vector<2x8x32xbf16>,
    return
  }
  func.func @transform_0(%arg0: i32) -> (i32, i32) {
    %c0_i32 = arith.constant 0 : i32
    %c0_i32_0 = arith.constant 0 : i32
    return %arg0, %c0_i32 : i32, i32
  }
  func.func @transform_1(%arg0: i32) -> (i32, i32, i32) {
    %c0_i32 = arith.constant 0 : i32
    %c0_i32_0 = arith.constant 0 : i32
    %c0_i32_1 = arith.constant 0 : i32
    return %arg0, %c0_i32, %c0_i32_0 : i32, i32, i32
  }
  func.func @transform_2(%arg0: i32) -> (i32, i32) {
    %c0_i32 = arith.constant 0 : i32
    %c0_i32_0 = arith.constant 0 : i32
    %c0_i32_1 = arith.constant 0 : i32
    return %c0_i32, %c0_i32_0 : i32, i32
  }
  func.func @transform_3(%arg0: i32) -> (i32, i32) {
    %c0_i32 = arith.constant 0 : i32
    %c0_i32_0 = arith.constant 0 : i32
    %c0_i32_1 = arith.constant 0 : i32
    return %c0_i32, %c0_i32_0 : i32, i32
  }
  func.func @transform_4(%arg0: i32) -> (i32, i32) {
    %c0_i32 = arith.constant 0 : i32
    %c0_i32_0 = arith.constant 0 : i32
    %c0_i32_1 = arith.constant 0 : i32
    return %c0_i32, %c0_i32_0 : i32, i32
  }
  func.func @transform_5(%arg0: i32) -> (i32, i32) {
    %c0_i32 = arith.constant 0 : i32
    %c0_i32_0 = arith.constant 0 : i32
    %c0_i32_1 = arith.constant 0 : i32
    return %c0_i32, %c0_i32_0 : i32, i32
  }
  func.func @transform_6(%arg0: i32) -> (i32, i32) {
    %c0_i32 = arith.constant 0 : i32
    %c0_i32_0 = arith.constant 0 : i32
    %c0_i32_1 = arith.constant 0 : i32
    return %c0_i32, %c0_i32_0 : i32, i32
  }
  func.func @transform_7(%arg0: i32) -> (i32, i32) {
    %c0_i32 = arith.constant 0 : i32
    %c0_i32_0 = arith.constant 0 : i32
    %c0_i32_1 = arith.constant 0 : i32
    return %c0_i32, %c0_i32_0 : i32, i32
  }
  func.func @transform_8(%arg0: i32) -> (i32, i32) {
    %c0_i32 = arith.constant 0 : i32
    %c0_i32_0 = arith.constant 0 : i32
    %c0_i32_1 = arith.constant 0 : i32
    return %c0_i32, %c0_i32_0 : i32, i32
  }
  func.func @transform_9(%arg0: i32) -> (i32, i32) {
    %c0_i32 = arith.constant 0 : i32
    %c0_i32_0 = arith.constant 0 : i32
    %c0_i32_1 = arith.constant 0 : i32
    return %c0_i32, %c0_i32_0 : i32, i32
  }
  func.func @transform_10(%arg0: i32) -> (i32, i32) {
    %c0_i32 = arith.constant 0 : i32
    %c0_i32_0 = arith.constant 0 : i32
    %c0_i32_1 = arith.constant 0 : i32
    return %c0_i32, %c0_i32_0 : i32, i32
  }
  func.func @transform_11(%arg0: i32) -> (i32, i32) {
    %c0_i32 = arith.constant 0 : i32
    %c0_i32_0 = arith.constant 0 : i32
    %c0_i32_1 = arith.constant 0 : i32
    return %c0_i32, %c0_i32_0 : i32, i32
  }
  func.func @transform_12(%arg0: i32) -> (i32, i32) {
    %c0_i32 = arith.constant 0 : i32
    %c0_i32_0 = arith.constant 0 : i32
    %c0_i32_1 = arith.constant 0 : i32
    return %c0_i32, %c0_i32_0 : i32, i32
  }
  func.func @transform_13(%arg0: i32) -> (i32, i32) {
    %c0_i32 = arith.constant 0 : i32
    %c0_i32_0 = arith.constant 0 : i32
    %c0_i32_1 = arith.constant 0 : i32
    return %c0_i32, %c0_i32_0 : i32, i32
  }
  func.func @transform_14(%arg0: i32) -> (i32, i32, i32) {
    %c0_i32 = arith.constant 0 : i32
    %c0_i32_0 = arith.constant 0 : i32
    %c0_i32_1 = arith.constant 0 : i32
    return %arg0, %c0_i32, %c0_i32_0 : i32, i32, i32
  }
}

</mosaic_0001>

<bundles_post_ra>
// kernel: tpu_custom_call.1
= control target key start
LH: loop header
LB: loop body
LE: loop exit
PB: predicated region body
PF: predicated region fallthrough
CT: control target
= control target key end

     0   :  { %19 = vsyncpa [#allocation3], 0  ;;  %s1539_s0 = inlined_call_operand.vmem [shape: s32[2,1], index: 0, kind: input, shape index: {}]   ;;  %s1540_s1 = inlined_call_operand.hbm [shape: bf16[2,8,32], index: 1, kind: input, shape index: {}]   ;;  %s1541_s2 = inlined_call_operand.vmem [shape: bf16[32,96], index: 2, kind: input, shape index: {}]   ;;  %s1542_s3 = inlined_call_operand.vmem [shape: f32[1,96], index: 3, kind: input, shape index: {}]   ;;  %s1543_s4 = inlined_call_operand.vmem [shape: bf16[32,32], index: 4, kind: input, shape index: {}]   ;;  %s1544_s5 = inlined_call_operand.vmem [shape: f32[1,32], index: 5, kind: input, shape index: {}]   ;;  %s1545_s6 = inlined_call_operand.vmem [shape: f32[1,32], index: 6, kind: input, shape index: {}]   ;;  %s1546_s7 = inlined_call_operand.vmem [shape: f32[1,32], index: 7, kind: input, shape index: {}]   ;;  %s1547_s8 = inlined_call_operand.vmem [shape: bf16[32,64], index: 8, kind: input, shape index: {}]   ;;  %s1548_s9 = inlined_call_operand.vmem [shape: f32[1,64], index: 9, kind: input, shape index: {}]   ;;  %s1549_s10 = inlined_call_operand.vmem [shape: bf16[64,32], index: 10, kind: input, shape index: {}]   ;;  %s1550_s11 = inlined_call_operand.vmem [shape: f32[1,32], index: 11, kind: input, shape index: {}]   ;;  %s1551_s12 = inlined_call_operand.vmem [shape: f32[1,32], index: 12, kind: input, shape index: {}]   ;;  %s1552_s13 = inlined_call_operand.vmem [shape: f32[1,32], index: 13, kind: input, shape index: {}]   ;;  %s1553_s14 = inlined_call_operand.hbm [shape: bf16[2,8,32], index: 14, kind: output, shape index: {}]  }
   0x1   :  { %20 = vsyncpa [#allocation4], 0  ;;  %s1272_s29 = smov [#allocation2]  }
   0x2   :  { %s28_s30 = sshll.u32 %s1272_s29, 4  ;;  %s29_s30 = int_to_ptr.vmem [resolvable:$true] %s28_s30 }
   0x3   :  { %s1236_s15 = scalar_lea.vmem %s29_s30, 128  ;;  %p1241_p1 = scmp.lt.s32.totalorder %s29_s30, %s29_s30 }
   0x4   :  { %p1237_p0 = scmp.ne.s32.totalorder %s29_s30, %s1236_s15  ;;  %p1242_p2 = scmp.lt.s32.totalorder %s1236_s15, %s1236_s15 }
   0x6   :  { %p1243_p3 = por %p1242_p2, %p1241_p1 }
   0x8   :  { %p1244_p4 = pnand %p1243_p3, %p1237_p0 }
   0xa   :  { %1247 = shalt.err (!%p1244_p4)
}
   0xb   :  { %s1273_s16 = smov 64   ;;  %s1274_s17 = smov 4  }
   0xc   :  { %34 = dma.hbm_to_vmem [thread:$0]  %s1540_s1, 128, %s29_s30, [#allocation3], %s1273_s16, %s1273_s16, %s1274_s17  }
   0xd   :  { %1268 = dma.done.wait [#allocation3], 128  }
   0xe   :  { %1269 = vsyncadd [#allocation3], 4294967168  ;;  %v1275_v0 = vmov 0.0   ;;  %vm1276_vm0 = vmmov 0   ;;  %v1192_v1 = vld [vmem:[%s1541_s2 + $0x8] sm:$0xff]   ;;  %v1193_v2 = vld [vmem:[%s1541_s2] sm:$0xff]   ;;  %v367_v18 = vlaneseq }
   0xf   :  { %1080 = vmatprep.subr.bf16.mxu0 %v1275_v0  ;;  %1084 = vmatprep.mubr.msk.bf16.mxu0 %vm1276_vm0, %v1275_v0  ;;  %v1376_v3 = vld [vmem:[#allocation2] sm:$0xff]   ;;  %vm95_vm1 = vcmask 261120   ;;  %v1019_v4 = vld [vmem:[%s1542_s3] ss:$0 sm:$0xff]  ;;  %s1277_s2 = smov 112   ;;  %s1278_s25 = smov 96  }
  0x10   :  { %1088 = vmatprep.subr.bf16.mxu1 %v1275_v0  ;;  %1090 = vmatprep.mubr.msk.bf16.mxu1 %vm1276_vm0, %v1275_v0  ;;  %v1279_v16 = vmov 0   ;;  %v1280_v19 = vmov 1966171168   ;;  %v363_v21 = vld [vmem:[%s1539_s0] sm:$0x3]  ;;  %v373_v23 = vshrl.u32 %v367_v18, 7 }
  0x11   :  { %1081 = vmatpush3.bf16.msra.mxu0 %v1192_v1  ;;  %1186 = vset.pattern.permute.xlu1 %v1279_v16  ;;  %v370_v20 = vunpack.c.l.s4 %v1280_v19  ;;  %v364_v24 = vrot.slane %v363_v21, 6  ;;  %vm365_vm2 = vcmask 1041408   ;;  %vm169_vm3 = vcmask 130048   ;;  %s1281_s30 = smov 16  }
  0x12   :  { %1082 = vmatprep.subr.bf16.mxu0 %v1275_v0  ;;  %1185 = vset.pattern.permute.xlu0 %v1279_v16  ;;  %v395_v39 = vsub.s32 0, %v373_v23  ;;  %v368_v58 = vand.u32 127, %v367_v18  ;;  %vm429_vm5 = vcmask 64512   ;;  %vm483_vm9 = vcmask 1043456  }
  0x13   :  { %v371_v22 = vunpack.c.0.s8 %v370_v20  ;;  %v366_v26 = vsel %vm365_vm2, %v363_v21, %v364_v24  ;;  %vm906_vm10 = vcmask 523264   ;;  %vm999_vm11 = vcmask 257024  }
  0x15   :  { %1083 = vmatpush3.bf16.msra.mxu0 %v1193_v2  ;;  %v374_v25 = vsub.s32 %v371_v22, %v373_v23 }
  0x16   :  { %1094 = vmatprep.subr.bf16.mxu0 %v1275_v0 }
  0x17   :  { %v375_v27 = vrot.slane %v366_v26, %v374_v25 }
  0x18   :  { %1085 = vmatmul.mubr.msk.bf16.vlgmr.msra.gmra.mxu0 %vm95_vm1, %v1376_v3 }
  0x19   :  { %1096 = vmatprep.mubr.msk.bf16.mxu0 %vm1276_vm0, %v1275_v0  ;;  %v376_v30 = vcombine.high %v375_v27, %v375_v27  ;;  %v383_v34 = vrot.slane %v375_v27, %v374_v25 }
  0x1b   :  { %v390_v38 = vrot.slane %v376_v30, %v374_v25  ;;  %v396_v41 = vrot.slane %v383_v34, %v395_v39  ;;  %v391_v45 = vcombine.high %v383_v34, %v383_v34 }
  0x1d   :  { %v392_v42 = vcombine.high %v390_v38, %v390_v38  ;;  %v400_v44 = vrot.slane %v390_v38, %v395_v39  ;;  %v404_v48 = vrot.slane %v391_v45, %v395_v39 }
  0x1f   :  { %v408_v46 = vrot.slane %v392_v42, %v395_v39 }
  0xd8   :  { %v133_v5 = vpop.f32.mrf.mxu0 }
  0xd9   :  { %v134_v7 = vadd.f32 %v1019_v4, %v133_v5 }
  0xda   :  { %v1086_v6 = vpop.f32.mrf.mxu0 }
  0xdb   :  { %v140_v11 = vmul.f32 0.25, %v134_v7  ;;  %v1392_v17 = vpack.c.bf16 %v134_v7, %v134_v7 }
  0xdc   :  { %v136_v8 = vpop.f32.mrf.mxu0 }
  0xdd   :  { %v137_v9 = vadd.f32 %v1019_v4, %v136_v8  ;;  %v150_v47 = vpack.c.bf16 %v140_v11, %v140_v11 }
  0xde   :  { %v1087_v10 = vpop.f32.mrf.mxu0 }
  0xdf   :  { %v141_v12 = vmul.f32 0.25, %v137_v9  ;;  %v1175_v13 = vpack.i.bf16 %v137_v9, %v134_v7  ;;  %v1387_v14 = vpack.c.bf16 %v137_v9, %v137_v9 }
  0xe1   :  { %1176 = vrot.lane.b32.xlu0 %v1175_v13, %s1277_s2  ;;  %217 = vrot.lane.b32.xlu1 %v1387_v14, %s1278_s25  ;;  %v1180_v15 = vpack.i.bf16 %v141_v12, %v140_v11  ;;  %v151_v43 = vpack.c.bf16 %v141_v12, %v141_v12 }
  0xe5   :  { %167 = vrot.lane.b32.xlu0 %v1392_v17, %s1278_s25 }
 0x153   :  { %v1177_v28 = vpop.permute.xlu0 %1176  ;;  %v218_v29 = vpop.permute.xlu1 %217 }
 0x154   :  { %v1179_v31 = vunpack.i.h.bf16 %v1177_v28  ;;  %v1178_v32 = vunpack.i.l.bf16 %v1177_v28  ;;  %v223_v33 = vsel %vm169_vm3, %v218_v29, 0 }
 0x155   :  { %1095 = vmatpush3.bf16.xpose.msra.mxu0 %v223_v33 }
 0x156   :  { %v1401_v35 = vpack.c.bf16 %v1179_v31, %v1179_v31  ;;  %v1403_v36 = vpack.c.bf16 %v1178_v32, %v1178_v32  ;;  %1106 = vmatprep.subr.bf16.mxu0 %v1275_v0 }
 0x157   :  { %v168_v37 = vpop.permute.xlu0 %167 }
 0x158   :  { %315 = vrot.lane.b32.xlu0 %v1401_v35, %s1278_s25  ;;  %266 = vrot.lane.b32.xlu1 %v1403_v36, %s1278_s25  ;;  %v174_v40 = vsel %vm169_vm3, %v168_v37, 0 }
 0x159   :  { %1089 = vmatpush3.bf16.xpose.msra.mxu1 %v174_v40 }
 0x15a   :  { %1100 = vmatprep.subr.bf16.mxu1 %v1275_v0 }
 0x15c   :  { %1181 = vrot.lane.b32.xlu1 %v1180_v15, %s1277_s2  ;;  %1097 = vmatmul.mubr.msk.bf16.vlgmr.msra.gmra.mxu0 %vm169_vm3, %v151_v43 }
 0x15d   :  { %410 = vperm.xlu0 %1185, %v396_v41   ;;  %1108 = vmatprep.mubr.msk.bf16.mxu0 %vm1276_vm0, %v1275_v0 }
 0x160   :  { %1091 = vmatmul.mubr.msk.bf16.vlgmr.msra.gmra.mxu1 %vm169_vm3, %v150_v47  ;;  %413 = vperm.xlu1 %1186, %v400_v44  }
 0x161   :  { %1102 = vmatprep.mubr.msk.bf16.mxu1 %vm1276_vm0, %v1275_v0  ;;  %419 = vperm.xlu0 %1185, %v408_v46  }
 0x164   :  { %416 = vperm.xlu1 %1186, %v404_v48  }
 0x1ca   :  { %v316_v49 = vpop.permute.xlu0 %315  ;;  %v267_v50 = vpop.permute.xlu1 %266 }
 0x1cb   :  { %v321_v51 = vsel %vm169_vm3, %v316_v49, 0  ;;  %v272_v52 = vsel %vm169_vm3, %v267_v50, 0 }
 0x1cc   :  { %1101 = vmatpush3.bf16.xpose.msra.mxu1 %v272_v52  ;;  %1107 = vmatpush3.bf16.xpose.msra.mxu0 %v321_v51 }
 0x1cd   :  { %1112 = vmatprep.subr.bf16.mxu1 %v1275_v0  ;;  %1118 = vmatprep.subr.bf16.mxu0 %v1275_v0 }
 0x1ce   :  { %v1182_v53 = vpop.permute.xlu1 %1181 }
 0x1cf   :  { %v1184_v54 = vunpack.i.h.bf16 %v1182_v53  ;;  %v1183_v55 = vunpack.i.l.bf16 %v1182_v53 }
 0x1d1   :  { %v153_v56 = vpack.c.bf16 %v1184_v54, %v1184_v54  ;;  %v152_v57 = vpack.c.bf16 %v1183_v55, %v1183_v55 }
 0x1d3   :  { %1103 = vmatmul.mubr.msk.bf16.vlgmr.msra.gmra.mxu1 %vm169_vm3, %v152_v57  ;;  %1109 = vmatmul.mubr.msk.bf16.vlgmr.msra.gmra.mxu0 %vm169_vm3, %v153_v56 }
 0x1d4   :  { %1114 = vmatprep.mubr.msk.bf16.mxu1 %vm1276_vm0, %v1275_v0  ;;  %1120 = vmatprep.mubr.msk.bf16.mxu0 %vm1276_vm0, %v1275_v0 }
 0x1d8   :  { %v411_v60 = vpop.permute.xlu0 %410 }
 0x1d9   :  { %vm421_vm6 = vcmp.lt.s32.totalorder %v368_v58, %v411_v60 }
 0x1db   :  { %v414_v59 = vpop.permute.xlu1 %413 }
 0x1dc   :  { %vm422_vm4 = vcmp.lt.s32.totalorder %v368_v58, %v414_v59  ;;  %v420_v11 = vpop.permute.xlu0 %419 }
 0x1dd   :  { %vm424_vm7 = vcmp.lt.s32.totalorder %v368_v58, %v420_v11 }
 0x1df   :  { %v417_v12 = vpop.permute.xlu1 %416 }
 0x1e0   :  { %vm423_vm8 = vcmp.lt.s32.totalorder %v368_v58, %v417_v12 }
 0x21c   :  { %v259_v61 = vpop.f32.mrf.mxu0 }
 0x21d   :  { %v426_v62 = vsel %vm422_vm4, %v259_v61, -1000000.0 }
 0x21e   :  { %v1098_v63 = vpop.f32.mrf.mxu0  ;;  %v433_v1 = vsel %vm429_vm5, %v426_v62, -inf }
 0x21f   :  { %434 = vmax.xlane.f32.xlu0 %v433_v1 }
 0x220   :  { %v210_v2 = vpop.f32.mrf.mxu1  ;;  %v262_v4 = vpop.f32.mrf.mxu0 }
 0x221   :  { %v425_v5 = vsel %vm421_vm6, %v210_v2, -1000000.0 }
 0x222   :  { %v1092_v6 = vpop.f32.mrf.mxu1  ;;  %v1099_v7 = vpop.f32.mrf.mxu0  ;;  %v430_v8 = vsel %vm429_vm5, %v425_v5, -inf }
 0x223   :  { %431 = vmax.xlane.f32.xlu1 %v430_v8  ;;  %v1195_v7 = vld [vmem:[%s1543_s4 + $0x8] sm:$0xff]  }
 0x224   :  { %v213_v9 = vpop.f32.mrf.mxu1 }
 0x226   :  { %v1093_v10 = vpop.f32.mrf.mxu1 }
 0x293   :  { %v308_v13 = vpop.f32.mrf.mxu1  ;;  %v357_v15 = vpop.f32.mrf.mxu0 }
 0x294   :  { %v427_v16 = vsel %vm423_vm8, %v308_v13, -1000000.0  ;;  %v428_v18 = vsel %vm424_vm7, %v357_v15, -1000000.0 }
 0x295   :  { %v1104_v19 = vpop.f32.mrf.mxu1  ;;  %v1110_v20 = vpop.f32.mrf.mxu0  ;;  %v436_v21 = vsel %vm429_vm5, %v427_v16, -inf  ;;  %v439_v22 = vsel %vm429_vm5, %v428_v18, -inf }
 0x296   :  { %437 = vmax.xlane.f32.xlu0 %v436_v21  ;;  %440 = vmax.xlane.f32.xlu1 %v439_v22 }
 0x297   :  { %v311_v23 = vpop.f32.mrf.mxu1  ;;  %v360_v24 = vpop.f32.mrf.mxu0 }
 0x299   :  { %v1105_v25 = vpop.f32.mrf.mxu1  ;;  %v1111_v26 = vpop.f32.mrf.mxu0 }
 0x2a7   :  { %527 = vrot.lane.b32.xlu1 %v1387_v14, %s1273_s16 }
 0x2a8   :  { %v435_v27 = vpop.xlane.xlu0 %434 }
 0x2a9   :  { %v443_v29 = vsub.f32 %v426_v62, %v435_v27 }
 0x2ab   :  { %v448_v31 = vmul.f32 1.442695, %v443_v29 }
 0x2ac   :  { %478 = vrot.lane.b32.xlu0 %v1392_v17, %s1273_s16  ;;  %v432_v28 = vpop.xlane.xlu1 %431 }
 0x2ad   :  { %v442_v30 = vsub.f32 %v425_v5, %v432_v28  ;;  %1204 = vpow2.f32 %v448_v31 }
 0x2af   :  { %v446_v32 = vmul.f32 1.442695, %v442_v30 }
 0x2b1   :  { %1206 = vpow2.f32 %v446_v32 }
 0x2ba   :  { %v1205_v33 = vpop.eup %1204 }
 0x2bb   :  { %v457_v38 = vsel %vm429_vm5, %v1205_v33, 0.0 }
 0x2be   :  { %v1207_v34 = vpop.eup %1206 }
 0x2bf   :  { %v454_v37 = vsel %vm429_vm5, %v1207_v34, 0.0 }
 0x2cb   :  { %455 = vadd.xlane.f32.xlu0 %v454_v37  ;;  %458 = vadd.xlane.f32.xlu1 %v457_v38  ;;  %v65_v37 = vunpack.c.l.bf16 %v1376_v3 }
 0x31f   :  { %v438_v14 = vpop.xlane.xlu0 %437  ;;  %v441_v39 = vpop.xlane.xlu1 %440 }
 0x320   :  { %v444_v40 = vsub.f32 %v427_v16, %v438_v14  ;;  %v445_v17 = vsub.f32 %v428_v18, %v441_v39  ;;  %v1196_v18 = vld [vmem:[%s1543_s4] sm:$0xff]   ;;  %s1282_s4 = smov [#allocation5]  }
 0x321   :  { %s1007_s15 = sshll.u32 %s1282_s4, 4  ;;  %s1008_s15 = int_to_ptr.vmem [resolvable:$true] %s1007_s15 }
 0x322   :  { %v450_v41 = vmul.f32 1.442695, %v444_v40  ;;  %v452_v42 = vmul.f32 1.442695, %v445_v17  ;;  %v66_v17 = vunpack.c.h.bf16 %v1376_v3  ;;  %p1253_p6 = scmp.lt.s32.totalorder %s1008_s15, %s1008_s15 }
 0x323   :  { %v479_v43 = vpop.permute.xlu0 %478  ;;  %v528_v44 = vpop.permute.xlu1 %527 }
 0x324   :  { %1208 = vpow2.f32 %v450_v41  ;;  %v485_v45 = vsel %vm483_vm9, %v479_v43, 0  ;;  %v533_v46 = vsel %vm483_vm9, %v528_v44, 0 }
 0x325   :  { %1210 = vpow2.f32 %v452_v42  ;;  %1113 = vmatpush3.bf16.msra.mxu1 %v485_v45  ;;  %1119 = vmatpush3.bf16.msra.mxu0 %v533_v46 }
 0x326   :  { %1124 = vmatprep.subr.bf16.mxu1 %v1275_v0  ;;  %1130 = vmatprep.subr.bf16.mxu0 %v1275_v0 }
 0x331   :  { %v1209_v47 = vpop.eup %1208 }
 0x332   :  { %v1211_v48 = vpop.eup %1210  ;;  %v460_v49 = vsel %vm429_vm5, %v1209_v47, 0.0 }
 0x333   :  { %461 = vadd.xlane.f32.xlu0 %v460_v49  ;;  %v463_v50 = vsel %vm429_vm5, %v1211_v48, 0.0 }
 0x334   :  { %464 = vadd.xlane.f32.xlu1 %v463_v50 }
 0x345   :  { %575 = vrot.lane.b32.xlu1 %v1403_v36, %s1273_s16 }
 0x349   :  { %623 = vrot.lane.b32.xlu0 %v1401_v35, %s1273_s16 }
 0x354   :  { %v456_v51 = vpop.xlane.xlu0 %455  ;;  %v459_v52 = vpop.xlane.xlu1 %458 }
 0x355   :  { %1212 = vrcp.f32 %v456_v51 }
 0x356   :  { %1214 = vrcp.f32 %v459_v52 }
 0x362   :  { %v1213_v53 = vpop.eup %1212 }
 0x363   :  { %v1215_v54 = vpop.eup %1214  ;;  %v470_v55 = vmul.f32 %v1213_v53, %v1207_v34  ;;  %v1032_v34 = vld [vmem:[%s1544_s5] ss:$0 sm:$0xff] }
 0x364   :  { %v471_v56 = vmul.f32 %v1215_v54, %v1205_v33 }
 0x365   :  { %v474_v57 = vpack.c.bf16 %v470_v55, %v470_v55 }
 0x366   :  { %v475_v58 = vpack.c.bf16 %v471_v56, %v471_v56  ;;  %v1197_v56 = vld [vmem:[%s1547_s8 + $0x8] sm:$0xff]  }
 0x367   :  { %1115 = vmatmul.mubr.msk.bf16.vlgmr.msra.gmra.mxu1 %vm429_vm5, %v474_v57  ;;  %v1198_v57 = vld [vmem:[%s1547_s8] sm:$0xff]  }
 0x368   :  { %1121 = vmatmul.mubr.msk.bf16.vlgmr.msra.gmra.mxu0 %vm429_vm5, %v475_v58  ;;  %1126 = vmatprep.mubr.msk.bf16.mxu1 %vm1276_vm0, %v1275_v0  ;;  %v1199_v58 = vld [vmem:[%s1549_s10 + $0x18] sm:$0xff]  }
 0x369   :  { %1132 = vmatprep.mubr.msk.bf16.mxu0 %vm1276_vm0, %v1275_v0 }
 0x3bc   :  { %v462_v35 = vpop.xlane.xlu0 %461 }
 0x3bd   :  { %1216 = vrcp.f32 %v462_v35  ;;  %v465_v36 = vpop.xlane.xlu1 %464 }
 0x3be   :  { %1218 = vrcp.f32 %v465_v36 }
 0x3c0   :  { %v624_v59 = vpop.permute.xlu0 %623 }
 0x3c1   :  { %v629_v60 = vsel %vm483_vm9, %v624_v59, 0  ;;  %v576_v61 = vpop.permute.xlu1 %575 }
 0x3c2   :  { %v581_v62 = vsel %vm483_vm9, %v576_v61, 0  ;;  %1131 = vmatpush3.bf16.msra.mxu0 %v629_v60 }
 0x3c3   :  { %1125 = vmatpush3.bf16.msra.mxu1 %v581_v62  ;;  %1144 = vmatprep.subr.bf16.mxu0 %v1275_v0 }
 0x3c4   :  { %1136 = vmatprep.subr.bf16.mxu1 %v1275_v0 }
 0x3ca   :  { %v1217_v63 = vpop.eup %1216 }
 0x3cb   :  { %v1219_v1 = vpop.eup %1218  ;;  %v472_v2 = vmul.f32 %v1217_v63, %v1209_v47 }
 0x3cc   :  { %v473_v4 = vmul.f32 %v1219_v1, %v1211_v48 }
 0x3cd   :  { %v476_v5 = vpack.c.bf16 %v472_v2, %v472_v2  ;;  %v1036_v2 = vld [vmem:[%s1545_s6] ss:$0 sm:$0xff] }
 0x3ce   :  { %v477_v6 = vpack.c.bf16 %v473_v4, %v473_v4 }
 0x3cf   :  { %1127 = vmatmul.mubr.msk.bf16.vlgmr.msra.gmra.mxu1 %vm429_vm5, %v476_v5 }
 0x3d0   :  { %1133 = vmatmul.mubr.msk.bf16.vlgmr.msra.gmra.mxu0 %vm429_vm5, %v477_v6  ;;  %1140 = vmatprep.mubr.msk.bf16.mxu1 %vm1276_vm0, %v1275_v0 }
 0x3d1   :  { %1148 = vmatprep.mubr.msk.bf16.mxu0 %vm1276_vm0, %v1275_v0  ;;  %1137 = vmatpush3.bf16.msra.mxu1 %v1195_v7  ;;  %v1037_v7 = vld [vmem:[%s1546_s7] ss:$0 sm:$0xff] }
 0x3d2   :  { %1138 = vmatprep.subr.bf16.mxu1 %v1275_v0  ;;  %1145 = vmatpush3.bf16.msra.mxu0 %v1197_v56 }
 0x3d3   :  { %1146 = vmatprep.subr.bf16.mxu0 %v1275_v0 }
 0x3d5   :  { %1139 = vmatpush3.bf16.msra.mxu1 %v1196_v18 }
 0x3d6   :  { %1152 = vmatprep.subr.bf16.mxu1 %v1275_v0  ;;  %1147 = vmatpush3.bf16.msra.mxu0 %v1198_v57 }
 0x427   :  { %v521_v8 = vpop.f32.mrf.mxu1 }
 0x428   :  { %v569_v9 = vpop.f32.mrf.mxu0 }
 0x429   :  { %v1116_v10 = vpop.f32.mrf.mxu1 }
 0x42a   :  { %v1122_v11 = vpop.f32.mrf.mxu0 }
 0x42b   :  { %v524_v12 = vpop.f32.mrf.mxu1 }
 0x42c   :  { %v572_v13 = vpop.f32.mrf.mxu0  ;;  %v1200_v12 = vld [vmem:[%s1549_s10 + $0x10] sm:$0xff]  }
 0x42d   :  { %v1117_v15 = vpop.f32.mrf.mxu1  ;;  %v1201_v13 = vld [vmem:[%s1549_s10 + $0x8] sm:$0xff]  }
 0x42e   :  { %v1123_v16 = vpop.f32.mrf.mxu0  ;;  %v1202_v15 = vld [vmem:[%s1549_s10] sm:$0xff]  }
 0x42f   :  { %v1038_v16 = vld [vmem:[%s1548_s9] ss:$0 sm:$0xff] }
 0x48f   :  { %v617_v19 = vpop.f32.mrf.mxu1 }
 0x490   :  { %v665_v20 = vpop.f32.mrf.mxu0 }
 0x491   :  { %v1187_v21 = vpack.i.bf16 %v665_v20, %v617_v19  ;;  %v1128_v22 = vpop.f32.mrf.mxu1 }
 0x492   :  { %v1134_v23 = vpop.f32.mrf.mxu0 }
 0x493   :  { %1188 = vrot.lane.b32.xlu1 %v1187_v21, %s1281_s30  ;;  %v620_v24 = vpop.f32.mrf.mxu1 }
 0x494   :  { %v668_v25 = vpop.f32.mrf.mxu0 }
 0x495   :  { %v1129_v26 = vpop.f32.mrf.mxu1 }
 0x496   :  { %v1135_v27 = vpop.f32.mrf.mxu0 }
 0x505   :  { %v1189_v28 = vpop.permute.xlu1 %1188 }
 0x506   :  { %v1191_v29 = vunpack.i.h.bf16 %v1189_v28  ;;  %v1190_v30 = vunpack.i.l.bf16 %v1189_v28 }
 0x508   :  { %v680_v31 = vsel %vm169_vm3, %v569_v9, %v1191_v29  ;;  %v679_v32 = vsel %vm169_vm3, %v521_v8, %v1190_v30 }
 0x509   :  { %v681_v33 = vpack.c.bf16 %v680_v31, %v679_v32 }
 0x50b   :  { %1141 = vmatmul.mubr.msk.bf16.vlgmr.msra.gmra.mxu1 %vm95_vm1, %v681_v33 }
 0x50c   :  { %1160 = vmatprep.mubr.msk.bf16.mxu1 %vm1276_vm0, %v1275_v0  ;;  %1153 = vmatpush3.bf16.msra.mxu1 %v1199_v58 }
 0x50d   :  { %1154 = vmatprep.subr.bf16.mxu1 %v1275_v0 }
 0x510   :  { %1155 = vmatpush3.bf16.msra.mxu1 %v1200_v12 }
 0x511   :  { %1156 = vmatprep.subr.bf16.mxu1 %v1275_v0 }
 0x514   :  { %1157 = vmatpush3.bf16.msra.mxu1 %v1201_v13 }
 0x515   :  { %1158 = vmatprep.subr.bf16.mxu1 %v1275_v0  ;;  %v1042_v0 = vld [vmem:[%s1550_s11] ss:$0 sm:$0xff] }
 0x518   :  { %1159 = vmatpush3.bf16.msra.mxu1 %v1202_v15 }
 0x5cb   :  { %v742_v38 = vpop.f32.mrf.mxu1 }
 0x5cc   :  { %v743_v14 = vadd.f32 %v1032_v34, %v742_v38 }
 0x5cd   :  { %v1142_v39 = vpop.f32.mrf.mxu1 }
 0x5ce   :  { %v749_v40 = vadd.f32 %v743_v14, %v65_v37 }
 0x5cf   :  { %v745_v41 = vpop.f32.mrf.mxu1 }
 0x5d0   :  { %v746_v42 = vadd.f32 %v1032_v34, %v745_v41  ;;  %v753_v43 = vsel %vm95_vm1, %v749_v40, 0.0 }
 0x5d1   :  { %v1143_v44 = vpop.f32.mrf.mxu1  ;;  %754 = vadd.xlane.f32.xlu0 %v753_v43 }
 0x5d2   :  { %v750_v45 = vadd.f32 %v746_v42, %v66_v17 }
 0x5d4   :  { %v756_v46 = vsel %vm95_vm1, %v750_v45, 0.0 }
 0x5d5   :  { %757 = vadd.xlane.f32.xlu1 %v756_v46 }
 0x65a   :  { %v755_v47 = vpop.xlane.xlu0 %754 }
 0x65b   :  { %v760_v48 = vmul.f32 0.03125, %v755_v47 }
 0x65d   :  { %v762_v49 = vsub.f32 %v749_v40, %v760_v48 }
 0x65e   :  { %v758_v50 = vpop.xlane.xlu1 %757 }
 0x65f   :  { %v761_v51 = vmul.f32 0.03125, %v758_v50  ;;  %v764_v52 = vmul.f32 %v762_v49, %v762_v49 }
 0x661   :  { %v763_v53 = vsub.f32 %v750_v45, %v761_v51  ;;  %v766_v54 = vsel %vm95_vm1, %v764_v52, 0.0 }
 0x662   :  { %767 = vadd.xlane.f32.xlu0 %v766_v54  ;;  %v1048_v54 = vld [vmem:[%s1551_s12] ss:$0 sm:$0xff]  ;;  %s1248_s12 = scalar_lea.vmem %s1008_s15, 128 }
 0x663   :  { %v765_v3 = vmul.f32 %v763_v53, %v763_v53  ;;  %p1249_p5 = scmp.ne.s32.totalorder %s1008_s15, %s1248_s12  ;;  %p1254_p7 = scmp.lt.s32.totalorder %s1248_s12, %s1248_s12 }
 0x665   :  { %v769_v55 = vsel %vm95_vm1, %v765_v3, 0.0  ;;  %p1255_p8 = por %p1254_p7, %p1253_p6 }
 0x666   :  { %770 = vadd.xlane.f32.xlu0 %v769_v55  ;;  %v1049_v55 = vld [vmem:[%s1552_s13] ss:$0 sm:$0xff] }
 0x667   :  { %p1256_p9 = pnand %p1255_p8, %p1249_p5 }
 0x6eb   :  { %v768_v35 = vpop.xlane.xlu0 %767 }
 0x6ec   :  { %v772_v36 = vmul.f32 0.03125, %v768_v35 }
 0x6ee   :  { %v774_v59 = vadd.f32 1e-05, %v772_v36 }
 0x6ef   :  { %v771_v60 = vpop.xlane.xlu0 %770 }
 0x6f0   :  { %1220 = vrsqrt.f32 %v774_v59  ;;  %v773_v61 = vmul.f32 0.03125, %v771_v60 }
 0x6f2   :  { %v775_v62 = vadd.f32 1e-05, %v773_v61 }
 0x6f4   :  { %1222 = vrsqrt.f32 %v775_v62 }
 0x6fd   :  { %v1221_v63 = vpop.eup %1220 }
 0x6fe   :  { %v778_v1 = vmul.f32 %v1221_v63, %v762_v49 }
 0x700   :  { %v786_v6 = vmul.f32 %v1036_v2, %v778_v1 }
 0x701   :  { %v1223_v4 = vpop.eup %1222 }
 0x702   :  { %v779_v5 = vmul.f32 %v1223_v4, %v763_v53  ;;  %v794_v9 = vadd.f32 %v1037_v7, %v786_v6 }
 0x704   :  { %v787_v8 = vmul.f32 %v1036_v2, %v779_v5 }
 0x706   :  { %v795_v10 = vadd.f32 %v1037_v7, %v787_v8 }
 0x708   :  { %v796_v11 = vpack.c.bf16 %v795_v10, %v794_v9 }
 0x70a   :  { %1149 = vmatmul.mubr.msk.bf16.vlgmr.msra.gmra.mxu0 %vm95_vm1, %v796_v11 }
 0x7ca   :  { %v857_v18 = vpop.f32.mrf.mxu0 }
 0x7cb   :  { %v858_v20 = vadd.f32 %v1038_v16, %v857_v18 }
 0x7cc   :  { %v1150_v19 = vpop.f32.mrf.mxu0 }
 0x7cd   :  { %v864_v24 = vmax.f32 %v858_v20, 0.0 }
 0x7ce   :  { %v860_v21 = vpop.f32.mrf.mxu0 }
 0x7cf   :  { %v861_v22 = vadd.f32 %v1038_v16, %v860_v21 }
 0x7d0   :  { %v1151_v23 = vpop.f32.mrf.mxu0 }
 0x7d1   :  { %v865_v25 = vmax.f32 %v861_v22, 0.0 }
 0x7d3   :  { %v866_v26 = vpack.c.bf16 %v865_v25, %v864_v24 }
 0x7d5   :  { %1161 = vmatmul.mubr.msk.bf16.vlgmr.msra.gmra.mxu1 %vm906_vm10, %v866_v26 }
 0x895   :  { %v944_v27 = vpop.f32.mrf.mxu1 }
 0x896   :  { %v945_v28 = vadd.f32 %v1042_v0, %v944_v27 }
 0x897   :  { %v1162_v29 = vpop.f32.mrf.mxu1 }
 0x898   :  { %v951_v30 = vadd.f32 %v945_v28, %v794_v9 }
 0x899   :  { %v947_v31 = vpop.f32.mrf.mxu1 }
 0x89a   :  { %v948_v32 = vadd.f32 %v1042_v0, %v947_v31  ;;  %v955_v33 = vsel %vm95_vm1, %v951_v30, 0.0 }
 0x89b   :  { %956 = vadd.xlane.f32.xlu1 %v955_v33  ;;  %v1163_v34 = vpop.f32.mrf.mxu1 }
 0x89c   :  { %v952_v37 = vadd.f32 %v948_v32, %v795_v10 }
 0x89e   :  { %v958_v38 = vsel %vm95_vm1, %v952_v37, 0.0 }
 0x89f   :  { %959 = vadd.xlane.f32.xlu0 %v958_v38 }
 0x924   :  { %v957_v14 = vpop.xlane.xlu1 %956 }
 0x925   :  { %v961_v39 = vmul.f32 0.03125, %v957_v14 }
 0x927   :  { %v963_v40 = vsub.f32 %v951_v30, %v961_v39 }
 0x928   :  { %v960_v17 = vpop.xlane.xlu0 %959 }
 0x929   :  { %v962_v41 = vmul.f32 0.03125, %v960_v17  ;;  %v965_v42 = vmul.f32 %v963_v40, %v963_v40 }
 0x92b   :  { %v964_v43 = vsub.f32 %v952_v37, %v962_v41  ;;  %v967_v44 = vsel %vm95_vm1, %v965_v42, 0.0 }
 0x92c   :  { %968 = vadd.xlane.f32.xlu1 %v967_v44 }
 0x92d   :  { %v966_v45 = vmul.f32 %v964_v43, %v964_v43 }
 0x92f   :  { %v970_v46 = vsel %vm95_vm1, %v966_v45, 0.0 }
 0x930   :  { %971 = vadd.xlane.f32.xlu0 %v970_v46 }
 0x9b5   :  { %v969_v47 = vpop.xlane.xlu1 %968 }
 0x9b6   :  { %v973_v48 = vmul.f32 0.03125, %v969_v47 }
 0x9b8   :  { %v975_v49 = vadd.f32 1e-05, %v973_v48 }
 0x9b9   :  { %v972_v50 = vpop.xlane.xlu0 %971 }
 0x9ba   :  { %1224 = vrsqrt.f32 %v975_v49  ;;  %v974_v51 = vmul.f32 0.03125, %v972_v50 }
 0x9bc   :  { %v976_v52 = vadd.f32 1e-05, %v974_v51 }
 0x9be   :  { %1226 = vrsqrt.f32 %v976_v52 }
 0x9c7   :  { %v1225_v53 = vpop.eup %1224 }
 0x9c8   :  { %v979_v3 = vmul.f32 %v1225_v53, %v963_v40 }
 0x9ca   :  { %v987_v56 = vmul.f32 %v1048_v54, %v979_v3 }
 0x9cb   :  { %v1227_v57 = vpop.eup %1226 }
 0x9cc   :  { %v980_v58 = vmul.f32 %v1227_v57, %v964_v43  ;;  %v995_v35 = vadd.f32 %v1049_v55, %v987_v56 }
 0x9ce   :  { %v988_v36 = vmul.f32 %v1048_v54, %v980_v58  ;;  %v997_v59 = vpack.c.bf16 %v995_v35, %v995_v35 }
 0x9d0   :  { %v996_v60 = vadd.f32 %v1049_v55, %v988_v36  ;;  %1000 = vst.msk [vmem:[#allocation5] sm:$0xf] %vm999_vm11, %v997_v59 }
 0x9d2   :  { %v998_v61 = vpack.c.bf16 %v996_v60, %v996_v60 }
 0x9d4   :  { %1001 = vst.msk [vmem:[#allocation5 + $0x4] sm:$0xf] %vm999_vm11, %v998_v61 }
 0x9d5   :  { %1259 = shalt.err (!%p1256_p9)
}
 0x9d6   :  { %1013 = dma.vmem_to_hbm [thread:$0]  %s1008_s15, 128, %s1553_s14, [#allocation4], %s1273_s16, %s1273_s16, %s1274_s17  }
 0x9d7   :  { %1270 = dma.done.wait [#allocation4], 128  }
 0x9d8   :  { %1271 = vsyncadd [#allocation4], 4294967168 }
 0x9d9   :  { %1017 = vsyncpa [#allocation3], 1 }
 0x9da   :  { %1018 = vsyncpa [#allocation4], 1 }

</bundles_post_ra>
